<compile_context>
chip_gen: v7x
topology: tpu7x:2x2x1
jax: 0.10.0
libtpu: 0.0.40
codegen_flags: <defaults>
</compile_context>

<pallas_src>
import jax
import jax.numpy as jnp
from jax.experimental import pallas as pl
from jax.experimental.pallas import tpu as pltpu

EPS = 1e-5


def _round_up(x, m):
    return ((x + m - 1) // m) * m


def _choose_tb(B, *, tb_cap=2048, min_steps=2):
    """Batch-tile selection.

    Priorities: (1) minimize padded rows (padding is a 1:1 HBM/MXU loss on a
    memory-bound kernel), (2) prefer >= min_steps grid steps so "parallel"
    dimension semantics can shard across v7x's 2 TensorCores, (3) prefer the
    largest remaining tile (amortize ~0.35 us per-grid-step overhead).
    """
    mult = 128 if B >= 256 else 8
    hi = max(mult, min(tb_cap, _round_up(B, mult)))
    best_key, best_tb = None, mult
    for tb in range(mult, hi + 1, mult):
        steps = -(-B // tb)
        padded = steps * tb
        key = (padded, 0 if steps >= min_steps else 1, -tb)
        if best_key is None or key < best_key:
            best_key, best_tb = key, tb
    return best_tb


def mlp_kernel(x_ref, w1_ref, b1_ref, w2_ref, b2_ref, w3_ref, b3_ref,
               w4_ref, b4_ref, o_ref):
    # f32 x tile -> bf16 for the MXU (VPU cast hides under the input DMA).
    x = x_ref[...].astype(jnp.bfloat16)
    # Layer 1: Linear(D,256)+BN(folded)+ReLU   (Dropout(0.2) = identity in eval)
    h = jnp.dot(x, w1_ref[...], preferred_element_type=jnp.float32)
    h = jnp.maximum(h + b1_ref[...], 0.0).astype(jnp.bfloat16)
    # Layer 2: Linear(256,128)+BN+ReLU          (Dropout(0.3) = identity)
    h = jnp.dot(h, w2_ref[...], preferred_element_type=jnp.float32)
    h = jnp.maximum(h + b2_ref[...], 0.0).astype(jnp.bfloat16)
    # Layer 3: Linear(128,64->pad 128)+BN+ReLU  (Dropout(0.4) = identity)
    h = jnp.dot(h, w3_ref[...], preferred_element_type=jnp.float32)
    h = jnp.maximum(h + b3_ref[...], 0.0).astype(jnp.bfloat16)
    # Output head: Linear(64->pad 128, n_classes->pad 128)
    o_ref[...] = jnp.dot(h, w4_ref[...], preferred_element_type=jnp.float32) + b4_ref[...]


def pack_params(params):
    """Fold BN (eval running stats) into the Linears, zero-pad to lane-friendly
    sizes, cast weights to bf16.  Call ONCE per parameter set (hoisted out of
    the per-forward path)."""
    def fold(w, b, g, be, m, v):
        scale = g * jax.lax.rsqrt(v + EPS)              # (1, out)
        return w * scale, (b - m) * scale + be          # (in,out), (1,out)

    w1, b1 = fold(params["w1"], params["b1"], params["g1"], params["be1"],
                  params["m1"], params["v1"])
    w2, b2 = fold(params["w2"], params["b2"], params["g2"], params["be2"],
                  params["m2"], params["v2"])
    w3, b3 = fold(params["w3"], params["b3"], params["g3"], params["be3"],
                  params["m3"], params["v3"])
    w4, b4 = params["w4"], params["b4"]

    D, H1 = w1.shape
    H2 = w2.shape[1]
    H3 = w3.shape[1]
    n_classes = w4.shape[1]

    D_pad = _round_up(D, 128)
    H3_pad = _round_up(H3, 128)
    N_pad = _round_up(max(n_classes, 128), 128)

    if D_pad != D:
        w1 = jnp.pad(w1, ((0, D_pad - D), (0, 0)))
    if H3_pad != H3:
        # ReLU(0) = 0 -> zero-padded columns/rows are numerically inert.
        w3 = jnp.pad(w3, ((0, 0), (0, H3_pad - H3)))
        b3 = jnp.pad(b3, ((0, 0), (0, H3_pad - H3)))
        w4 = jnp.pad(w4, ((0, H3_pad - H3), (0, 0)))
    if N_pad != n_classes:
        w4 = jnp.pad(w4, ((0, 0), (0, N_pad - n_classes)))
        b4 = jnp.pad(b4, ((0, 0), (0, N_pad - n_classes)))

    return {
        "w1": w1.astype(jnp.bfloat16), "b1": b1.astype(jnp.float32),
        "w2": w2.astype(jnp.bfloat16), "b2": b2.astype(jnp.float32),
        "w3": w3.astype(jnp.bfloat16), "b3": b3.astype(jnp.float32),
        "w4": w4.astype(jnp.bfloat16), "b4": b4.astype(jnp.float32),
        "D": D, "D_pad": D_pad, "H1": H1, "H2": H2, "H3_pad": H3_pad,
        "n_classes": n_classes, "N_pad": N_pad,
    }


def improved_mlp_forward(x_nchw, packed, *, tb_cap=2048):
    """Fused MLP forward.  x_nchw: (B, ...) float; packed: output of pack_params."""
    B = x_nchw.shape[0]
    x = x_nchw.reshape(B, -1).astype(jnp.float32)       # x.view(B, -1), stays f32
    D, D_pad = packed["D"], packed["D_pad"]
    H1, H2 = packed["H1"], packed["H2"]
    H3_pad, N_pad = packed["H3_pad"], packed["N_pad"]
    n_classes = packed["n_classes"]
    assert x.shape[1] == D, f"expected flattened dim {D}, got {x.shape[1]}"

    if D_pad != D:
        x = jnp.pad(x, ((0, 0), (0, D_pad - D)))

    # Keep the double-buffered f32 x tile within ~24 MiB of VMEM (v7x headroom).
    tb_vmem_cap = max(128, (((24 << 20) // (8 * D_pad)) // 128) * 128)
    TB = _choose_tb(B, tb_cap=min(tb_cap, tb_vmem_cap))
    B_pad = _round_up(B, TB)
    if B_pad != B:
        x = jnp.pad(x, ((0, B_pad - B), (0, 0)))
    grid = (B_pad // TB,)

    const = lambda i: (0, 0)     # weights/biases stay VMEM-resident across steps
    # (Optional v7x tweak: pipeline_mode=pl.Buffered(1) on the constant-index
    #  weight specs reclaims their dead second buffer; omitted for portability.)
    in_specs = [
        pl.BlockSpec((TB, D_pad), lambda i: (i, 0)),
        pl.BlockSpec((D_pad, H1), const), pl.BlockSpec((1, H1), const),
        pl.BlockSpec((H1, H2), const), pl.BlockSpec((1, H2), const),
        pl.BlockSpec((H2, H3_pad), const), pl.BlockSpec((1, H3_pad), const),
        pl.BlockSpec((H3_pad, N_pad), const), pl.BlockSpec((1, N_pad), const),
    ]
    out_specs = pl.BlockSpec((TB, N_pad), lambda i: (i, 0))

    flops = 2 * B_pad * (D_pad * H1 + H1 * H2 + H2 * H3_pad + H3_pad * N_pad)
    bytes_accessed = (
        x.size * 4
        + (packed["w1"].size + packed["w2"].size
           + packed["w3"].size + packed["w4"].size) * 2
        + (packed["b1"].size + packed["b2"].size
           + packed["b3"].size + packed["b4"].size) * 4
        + B_pad * N_pad * 4
    )

    out = pl.pallas_call(
        mlp_kernel,
        out_shape=jax.ShapeDtypeStruct((B_pad, N_pad), jnp.float32),
        grid=grid,
        in_specs=in_specs,
        out_specs=out_specs,
        compiler_params=pltpu.CompilerParams(
            dimension_semantics=("parallel",),
            vmem_limit_bytes=48 << 20,
        ),
        cost_estimate=pl.CostEstimate(
            flops=flops, transcendentals=0, bytes_accessed=bytes_accessed),
    )(x, packed["w1"], packed["b1"], packed["w2"], packed["b2"],
      packed["w3"], packed["b3"], packed["w4"], packed["b4"])

    return out[:B, :n_classes]


# ----------------------------- reference / test -----------------------------

def _bn_relu(h, gamma, beta, mean, var):
    inv = jax.lax.rsqrt(var + EPS)
    return jnp.maximum((h - mean) * inv * gamma + beta, 0.0)


def init_params(key, input_dim, n_classes):
    """Deterministic init matching PyTorch shapes.

    Linear weights: uniform(-1/sqrt(fan_in), 1/sqrt(fan_in)), stored as (in, out).
    BatchNorm1d: gamma=1, beta=0, running_mean=0, running_var=1 (PyTorch defaults).
    """
    dims = [input_dim, 256, 128, 64, n_classes]
    params = {}
    keys = jax.random.split(key, 8)
    ki = 0
    for li in range(4):
        fan_in, fan_out = dims[li], dims[li + 1]
        bound = 1.0 / (fan_in ** 0.5)
        w = jax.random.uniform(keys[ki], (fan_in, fan_out), jnp.float32, -bound, bound)
        ki += 1
        b = jax.random.uniform(keys[ki], (1, fan_out), jnp.float32, -bound, bound)
        ki += 1
        params[f"w{li + 1}"] = w
        params[f"b{li + 1}"] = b
        if li < 3:  # BN after the first three linears
            params[f"g{li + 1}"] = jnp.ones((1, fan_out), jnp.float32)
            params[f"be{li + 1}"] = jnp.zeros((1, fan_out), jnp.float32)
            params[f"m{li + 1}"] = jnp.zeros((1, fan_out), jnp.float32)
            params[f"v{li + 1}"] = jnp.ones((1, fan_out), jnp.float32)
    return params


def reference_forward(x_nchw, params):
    """Pure-JAX f32 reference of the PyTorch eval-mode forward."""
    x = x_nchw.reshape(x_nchw.shape[0], -1).astype(jnp.float32)
    h = x @ params["w1"] + params["b1"]
    h = _bn_relu(h, params["g1"], params["be1"], params["m1"], params["v1"])
    h = h @ params["w2"] + params["b2"]
    h = _bn_relu(h, params["g2"], params["be2"], params["m2"], params["v2"])
    h = h @ params["w3"] + params["b3"]
    h = _bn_relu(h, params["g3"], params["be3"], params["m3"], params["v3"])
    return h @ params["w4"] + params["b4"]


if __name__ == "__main__":
    key = jax.random.PRNGKey(0)
    k_x, k_p = jax.random.split(key)

    B, C, H, W = 2, 4, 16, 16            # x.view(B, -1) -> input_dim = 1024
    input_dim = C * H * W
    n_classes = 10

    x = jax.random.normal(k_x, (B, C, H, W), jnp.float32)
    params = init_params(k_p, input_dim, n_classes)

    # BN fold / padding / bf16 cast done once, outside the forward path.
    packed = pack_params(params)
    packed = jax.tree_util.tree_map(
        lambda a: jax.block_until_ready(a) if isinstance(a, jax.Array) else a, packed)

    out = improved_mlp_forward(x, packed)
    out = jax.block_until_ready(out)

    ref = reference_forward(x, params)
    assert out.shape == (B, n_classes)
    # bf16 MXU inputs (f32 accumulation) -> looser tolerance than pure f32.
    assert jnp.allclose(out, ref, atol=5e-2, rtol=5e-2), "mismatch vs reference"

    print("KERNEL_OK")
</pallas_src>

<mosaic_0001>
module attributes {stable_mosaic.version = 11 : i64} {
  func.func @mlp_kernel(%arg0: i32, %arg1: memref<8x1024xf32, #tpu.memory_space<vmem>>, %arg2: memref<1024x256xbf16, #tpu.memory_space<vmem>>, %arg3: memref<1x256xf32, #tpu.memory_space<vmem>>, %arg4: memref<256x128xbf16, #tpu.memory_space<vmem>>, %arg5: memref<1x128xf32, #tpu.memory_space<vmem>>, %arg6: memref<128x128xbf16, #tpu.memory_space<vmem>>, %arg7: memref<1x128xf32, #tpu.memory_space<vmem>>, %arg8: memref<128x128xbf16, #tpu.memory_space<vmem>>, %arg9: memref<1x128xf32, #tpu.memory_space<vmem>>, %arg10: memref<8x128xf32, #tpu.memory_space<vmem>>) attributes {dimension_semantics = [#tpu.dimension_semantics<parallel>], iteration_bounds = array<i64: 1>, scalar_prefetch = 0 : i64, scratch_operands = 0 : i64, tpu.core_type = #tpu.core_type<tc>, window_params = [{transform_indices = @transform_0, window_bounds = array<i64: 8, 1024>}, {pipeline_mode = #tpu.pipeline_mode<synchronous>, transform_indices = @transform_1, window_bounds = array<i64: 1024, 256>}, {pipeline_mode = #tpu.pipeline_mode<synchronous>, transform_indices = @transform_2, window_bounds = array<i64: 1, 256>}, {pipeline_mode = #tpu.pipeline_mode<synchronous>, transform_indices = @transform_3, window_bounds = array<i64: 256, 128>}, {pipeline_mode = #tpu.pipeline_mode<synchronous>, transform_indices = @transform_4, window_bounds = array<i64: 1, 128>}, {pipeline_mode = #tpu.pipeline_mode<synchronous>, transform_indices = @transform_5, window_bounds = array<i64: 128, 128>}, {pipeline_mode = #tpu.pipeline_mode<synchronous>, transform_indices = @transform_6, window_bounds = array<i64: 1, 128>}, {pipeline_mode = #tpu.pipeline_mode<synchronous>, transform_indices = @transform_7, window_bounds = array<i64: 128, 128>}, {pipeline_mode = #tpu.pipeline_mode<synchronous>, transform_indices = @transform_8, window_bounds = array<i64: 1, 128>}, {transform_indices = @transform_9, window_bounds = array<i64: 8, 128>}]} {
    %c0 = arith.constant 0 : index
    %c0_0 = arith.constant 0 : index
    %0 = vector.load %arg1[%c0, %c0_0] : memref<8x1024xf32, #tpu.memory_space<vmem>>, vector<8x1024xf32>
    %1 = arith.truncf %0 : vector<8x1024xf32> to vector<8x1024xbf16>
    %c0_1 = arith.constant 0 : index
    %c0_2 = arith.constant 0 : index
    %2 = vector.load %arg2[%c0_1, %c0_2] : memref<1024x256xbf16, #tpu.memory_space<vmem>>, vector<1024x256xbf16>
    %cst = arith.constant dense<0.000000e+00> : vector<8x256xf32>
    %3 = tpu.matmul %1, %2, %cst {dimension_numbers = #tpu.dot_dimension_numbers<[1], [0], [0], [1], [0, 0, 1, 1], [], []>} : vector<8x1024xbf16>, vector<1024x256xbf16>, vector<8x256xf32> -> vector<8x256xf32>
    %c0_3 = arith.constant 0 : index
    %c0_4 = arith.constant 0 : index
    %4 = vector.load %arg3[%c0_3, %c0_4] : memref<1x256xf32, #tpu.memory_space<vmem>>, vector<1x256xf32>
    %5 = vector.broadcast %4 : vector<1x256xf32> to vector<8x256xf32>
    %6 = arith.addf %3, %5 : vector<8x256xf32>
    %cst_5 = arith.constant 0.000000e+00 : f32
    %7 = vector.broadcast %cst_5 : f32 to vector<8x256xf32>
    %8 = arith.maximumf %6, %7 : vector<8x256xf32>
    %9 = arith.truncf %8 : vector<8x256xf32> to vector<8x256xbf16>
    %c0_6 = arith.constant 0 : index
    %c0_7 = arith.constant 0 : index
    %10 = vector.load %arg4[%c0_6, %c0_7] : memref<256x128xbf16, #tpu.memory_space<vmem>>, vector<256x128xbf16>
    %cst_8 = arith.constant dense<0.000000e+00> : vector<8x128xf32>
    %11 = tpu.matmul %9, %10, %cst_8 {dimension_numbers = #tpu.dot_dimension_numbers<[1], [0], [0], [1], [0, 0, 1, 1], [], []>} : vector<8x256xbf16>, vector<256x128xbf16>, vector<8x128xf32> -> vector<8x128xf32>
    %c0_9 = arith.constant 0 : index
    %c0_10 = arith.constant 0 : index
    %12 = vector.load %arg5[%c0_9, %c0_10] : memref<1x128xf32, #tpu.memory_space<vmem>>, vector<1x128xf32>
    %13 = vector.broadcast %12 : vector<1x128xf32> to vector<8x128xf32>
    %14 = arith.addf %11, %13 : vector<8x128xf32>
    %cst_11 = arith.constant 0.000000e+00 : f32
    %15 = vector.broadcast %cst_11 : f32 to vector<8x128xf32>
    %16 = arith.maximumf %14, %15 : vector<8x128xf32>
    %17 = arith.truncf %16 : vector<8x128xf32> to vector<8x128xbf16>
    %c0_12 = arith.constant 0 : index
    %c0_13 = arith.constant 0 : index
    %18 = vector.load %arg6[%c0_12, %c0_13] : memref<128x128xbf16, #tpu.memory_space<vmem>>, vector<128x128xbf16>
    %cst_14 = arith.constant dense<0.000000e+00> : vector<8x128xf32>
    %19 = tpu.matmul %17, %18, %cst_14 {dimension_numbers = #tpu.dot_dimension_numbers<[1], [0], [0], [1], [0, 0, 1, 1], [], []>} : vector<8x128xbf16>, vector<128x128xbf16>, vector<8x128xf32> -> vector<8x128xf32>
    %c0_15 = arith.constant 0 : index
    %c0_16 = arith.constant 0 : index
    %20 = vector.load %arg7[%c0_15, %c0_16] : memref<1x128xf32, #tpu.memory_space<vmem>>, vector<1x128xf32>
    %21 = vector.broadcast %20 : vector<1x128xf32> to vector<8x128xf32>
    %22 = arith.addf %19, %21 : vector<8x128xf32>
    %cst_17 = arith.constant 0.000000e+00 : f32
    %23 = vector.broadcast %cst_17 : f32 to vector<8x128xf32>
    %24 = arith.maximumf %22, %23 : vector<8x128xf32>
    %25 = arith.truncf %24 : vector<8x128xf32> to vector<8x128xbf16>
    %c0_18 = arith.constant 0 : index
    %c0_19 = arith.constant 0 : index
    %26 = vector.load %arg8[%c0_18, %c0_19] : memref<128x128xbf16, #tpu.memory_space<vmem>>, vector<128x128xbf16>
    %cst_20 = arith.constant dense<0.000000e+00> : vector<8x128xf32>
    %27 = tpu.matmul %25, %26, %cst_20 {dimension_numbers = #tpu.dot_dimension_numbers<[1], [0], [0], [1], [0, 0, 1, 1], [], []>} : vector<8x128xbf16>, vector<128x128xbf16>, vector<8x128xf32> -> vector<8x128xf32>
    %c0_21 = arith.constant 0 : index
    %c0_22 = arith.constant 0 : index
    %28 = vector.load %arg9[%c0_21, %c0_22] : memref<1x128xf32, #tpu.memory_space<vmem>>, vector<1x128xf32>
    %29 = vector.broadcast %28 : vector<1x128xf32> to vector<8x128xf32>
    %30 = arith.addf %27, %29 : vector<8x128xf32>
    %c0_23 = arith.constant 0 : index
    %c0_24 = arith.constant 0 : index
    %31 = vector.load %arg10[%c0_23, %c0_24] : memref<8x128xf32, #tpu.memory_space<vmem>>, vector<8x128xf32>
    tpu.vector_store %arg10[%c0_23, %c0_24], %30 {strides = array<i32>} : memref<8x128xf32, #tpu.memory_space<vmem>>, vector<8x128xf32>,
    return
  }
  func.func @transform_0(%arg0: i32) -> (i32, i32) {
    %c0_i32 = arith.constant 0 : i32
    %c0_i32_0 = arith.constant 0 : i32
    return %arg0, %c0_i32 : i32, i32
  }
  func.func @transform_1(%arg0: i32) -> (i32, i32) {
    %c0_i32 = arith.constant 0 : i32
    %c0_i32_0 = arith.constant 0 : i32
    %c0_i32_1 = arith.constant 0 : i32
    return %c0_i32, %c0_i32_0 : i32, i32
  }
  func.func @transform_2(%arg0: i32) -> (i32, i32) {
    %c0_i32 = arith.constant 0 : i32
    %c0_i32_0 = arith.constant 0 : i32
    %c0_i32_1 = arith.constant 0 : i32
    return %c0_i32, %c0_i32_0 : i32, i32
  }
  func.func @transform_3(%arg0: i32) -> (i32, i32) {
    %c0_i32 = arith.constant 0 : i32
    %c0_i32_0 = arith.constant 0 : i32
    %c0_i32_1 = arith.constant 0 : i32
    return %c0_i32, %c0_i32_0 : i32, i32
  }
  func.func @transform_4(%arg0: i32) -> (i32, i32) {
    %c0_i32 = arith.constant 0 : i32
    %c0_i32_0 = arith.constant 0 : i32
    %c0_i32_1 = arith.constant 0 : i32
    return %c0_i32, %c0_i32_0 : i32, i32
  }
  func.func @transform_5(%arg0: i32) -> (i32, i32) {
    %c0_i32 = arith.constant 0 : i32
    %c0_i32_0 = arith.constant 0 : i32
    %c0_i32_1 = arith.constant 0 : i32
    return %c0_i32, %c0_i32_0 : i32, i32
  }
  func.func @transform_6(%arg0: i32) -> (i32, i32) {
    %c0_i32 = arith.constant 0 : i32
    %c0_i32_0 = arith.constant 0 : i32
    %c0_i32_1 = arith.constant 0 : i32
    return %c0_i32, %c0_i32_0 : i32, i32
  }
  func.func @transform_7(%arg0: i32) -> (i32, i32) {
    %c0_i32 = arith.constant 0 : i32
    %c0_i32_0 = arith.constant 0 : i32
    %c0_i32_1 = arith.constant 0 : i32
    return %c0_i32, %c0_i32_0 : i32, i32
  }
  func.func @transform_8(%arg0: i32) -> (i32, i32) {
    %c0_i32 = arith.constant 0 : i32
    %c0_i32_0 = arith.constant 0 : i32
    %c0_i32_1 = arith.constant 0 : i32
    return %c0_i32, %c0_i32_0 : i32, i32
  }
  func.func @transform_9(%arg0: i32) -> (i32, i32) {
    %c0_i32 = arith.constant 0 : i32
    %c0_i32_0 = arith.constant 0 : i32
    return %arg0, %c0_i32 : i32, i32
  }
}

</mosaic_0001>

<bundles_post_ra>
// kernel: tpu_custom_call.1
= control target key start
LH: loop header
LB: loop body
LE: loop exit
PB: predicated region body
PF: predicated region fallthrough
CT: control target
= control target key end

     0   :  { %14 = vsyncpa [#allocation3], 0  ;;  %s2287_s0 = inlined_call_operand.hbm [shape: f32[8,1024], index: 0, kind: input, shape index: {}]   ;;  %s2288_s1 = inlined_call_operand.hbm [shape: bf16[1024,256], index: 1, kind: input, shape index: {}]   ;;  %s2289_s2 = inlined_call_operand.vmem [shape: f32[1,256], index: 2, kind: input, shape index: {}]   ;;  %s2290_s3 = inlined_call_operand.hbm [shape: bf16[256,128], index: 3, kind: input, shape index: {}]   ;;  %s2291_s4 = inlined_call_operand.vmem [shape: f32[1,128], index: 4, kind: input, shape index: {}]   ;;  %s2292_s5 = inlined_call_operand.hbm [shape: bf16[128,128], index: 5, kind: input, shape index: {}]   ;;  %s2293_s6 = inlined_call_operand.vmem [shape: f32[1,128], index: 6, kind: input, shape index: {}]   ;;  %s2294_s7 = inlined_call_operand.hbm [shape: bf16[128,128], index: 7, kind: input, shape index: {}]   ;;  %s2295_s8 = inlined_call_operand.vmem [shape: f32[1,128], index: 8, kind: input, shape index: {}]   ;;  %s2296_s9 = inlined_call_operand.hbm [shape: f32[8,128], index: 9, kind: output, shape index: {}]  }
   0x1   :  { %15 = vsyncpa [#allocation6], 0 }
   0x2   :  { %16 = vsyncpa [#allocation9], 0 }
   0x3   :  { %17 = vsyncpa [#allocation4], 0  ;;  %s2114_s30 = smov [#allocation5]   ;;  %s1974_s13 = scalar_lea.hbm %s2288_s1, 16384 }
   0x4   :  { %s33_s10 = sshll.u32 %s2114_s30, 4  ;;  %p1975_p0 = scmp.ne.s32.totalorder %s2288_s1, %s1974_s13  ;;  %s34_s10 = int_to_ptr.vmem [resolvable:$true] %s33_s10 }
   0x5   :  { %p1978_p1 = scmp.lt.u32.totalorder %s1974_s13, %s2288_s1 }
   0x7   :  { %p1980_p2 = pnand %p1978_p1, %p1975_p0 }
   0x9   :  { %1983 = shalt.err (!%p1980_p2)
}
   0xa   :  { %s1984_s18 = scalar_lea.vmem %s34_s10, 16384  ;;  %p1989_p4 = scmp.lt.s32.totalorder %s34_s10, %s34_s10 }
   0xb   :  { %p1985_p3 = scmp.ne.s32.totalorder %s34_s10, %s1984_s18  ;;  %p1990_p5 = scmp.lt.s32.totalorder %s1984_s18, %s1984_s18 }
   0xd   :  { %p1991_p6 = por %p1990_p5, %p1989_p4 }
   0xf   :  { %p1992_p7 = pnand %p1991_p6, %p1985_p3 }
  0x11   :  { %1995 = shalt.err (!%p1992_p7)
}
  0x12   :  { %s2115_s19 = smov 128   ;;  %s2116_s20 = smov 8  }
  0x13   :  { %39 = dma.hbm_to_vmem [thread:$0]  %s2288_s1, 16384, %s34_s10, [#allocation6], %s2115_s19, %s2115_s19, %s2116_s20  }
  0x14   :  { %s2117_s23 = smov [#allocation8]   ;;  %s2118_s25 = smov [#allocation2]  }
  0x15   :  { %s61_s24 = sshll.u32 %s2117_s23, 4  ;;  %s24_s26 = sshll.u32 %s2118_s25, 4  ;;  %s62_s24 = int_to_ptr.vmem [resolvable:$true] %s61_s24  ;;  %s25_s26 = int_to_ptr.vmem [resolvable:$true] %s24_s26 }
  0x16   :  { %s1996_s29 = scalar_lea.hbm %s2292_s5, 1024 }
  0x17   :  { %p1997_p8 = scmp.ne.s32.totalorder %s2292_s5, %s1996_s29  ;;  %p2000_p9 = scmp.lt.u32.totalorder %s1996_s29, %s2292_s5 }
  0x19   :  { %p2002_p10 = pnand %p2000_p9, %p1997_p8 }
  0x1b   :  { %2005 = shalt.err (!%p2002_p10)
}
  0x1c   :  { %s2006_s1 = scalar_lea.vmem %s62_s24, 1024  ;;  %p2011_p12 = scmp.lt.s32.totalorder %s62_s24, %s62_s24 }
  0x1d   :  { %p2007_p11 = scmp.ne.s32.totalorder %s62_s24, %s2006_s1  ;;  %p2012_p13 = scmp.lt.s32.totalorder %s2006_s1, %s2006_s1 }
  0x1f   :  { %p2013_p0 = por %p2012_p13, %p2011_p12 }
  0x21   :  { %p2014_p1 = pnand %p2013_p0, %p2007_p11 }
  0x23   :  { %2017 = shalt.err (!%p2014_p1)
}
  0x24   :  { %s2119_s10 = smov 64   ;;  %s2120_s14 = smov 4  }
  0x25   :  { %67 = dma.hbm_to_vmem [thread:$0]  %s2292_s5, 1024, %s62_s24, [#allocation9], %s2119_s10, %s2119_s10, %s2120_s14  }
  0x26   :  { %s2018_s19 = scalar_lea.hbm %s2287_s0, 1024 }
  0x27   :  { %p2019_p2 = scmp.ne.s32.totalorder %s2287_s0, %s2018_s19  ;;  %p2022_p3 = scmp.lt.u32.totalorder %s2018_s19, %s2287_s0 }
  0x29   :  { %p2024_p4 = pnand %p2022_p3, %p2019_p2 }
  0x2b   :  { %2027 = shalt.err (!%p2024_p4)
}
  0x2c   :  { %s2028_s25 = scalar_lea.vmem %s25_s26, 1024  ;;  %p2033_p6 = scmp.lt.s32.totalorder %s25_s26, %s25_s26 }
  0x2d   :  { %p2029_p5 = scmp.ne.s32.totalorder %s25_s26, %s2028_s25  ;;  %p2034_p7 = scmp.lt.s32.totalorder %s2028_s25, %s2028_s25 }
  0x2f   :  { %p2035_p8 = por %p2034_p7, %p2033_p6 }
  0x31   :  { %p2036_p9 = pnand %p2035_p8, %p2029_p5 }
  0x33   :  { %2039 = shalt.err (!%p2036_p9)
}
  0x34   :  { %27 = dma.hbm_to_vmem [thread:$0]  %s2287_s0, 1024, %s25_s26, [#allocation3]  }
  0x35   :  { %s2121_s27 = smov [#allocation7]   ;;  %s2122_s29 = smov [#allocation10]  }
  0x36   :  { %s47_s28 = sshll.u32 %s2121_s27, 4  ;;  %s75_s30 = sshll.u32 %s2122_s29, 4  ;;  %s48_s28 = int_to_ptr.vmem [resolvable:$true] %s47_s28  ;;  %s76_s30 = int_to_ptr.vmem [resolvable:$true] %s75_s30 }
  0x37   :  { %s2040_s13 = scalar_lea.hbm %s2290_s3, 2048 }
  0x38   :  { %p2041_p10 = scmp.ne.s32.totalorder %s2290_s3, %s2040_s13  ;;  %p2044_p11 = scmp.lt.u32.totalorder %s2040_s13, %s2290_s3 }
  0x3a   :  { %p2046_p12 = pnand %p2044_p11, %p2041_p10 }
  0x3c   :  { %2049 = shalt.err (!%p2046_p12)
}
  0x3d   :  { %s2050_s0 = scalar_lea.vmem %s48_s28, 2048  ;;  %p2055_p0 = scmp.lt.s32.totalorder %s48_s28, %s48_s28 }
  0x3e   :  { %p2051_p13 = scmp.ne.s32.totalorder %s48_s28, %s2050_s0  ;;  %p2056_p1 = scmp.lt.s32.totalorder %s2050_s0, %s2050_s0 }
  0x40   :  { %p2057_p2 = por %p2056_p1, %p2055_p0 }
  0x42   :  { %p2058_p3 = pnand %p2057_p2, %p2051_p13 }
  0x44   :  { %2061 = shalt.err (!%p2058_p3)
}
  0x45   :  { %53 = dma.hbm_to_vmem [thread:$0]  %s2290_s3, 2048, %s48_s28, [#allocation6], %s2119_s10, %s2119_s10, %s2120_s14  }
  0x46   :  { %s2062_s21 = scalar_lea.hbm %s2294_s7, 1024 }
  0x47   :  { %p2063_p4 = scmp.ne.s32.totalorder %s2294_s7, %s2062_s21  ;;  %p2066_p5 = scmp.lt.u32.totalorder %s2062_s21, %s2294_s7 }
  0x49   :  { %p2068_p6 = pnand %p2066_p5, %p2063_p4 }
  0x4b   :  { %2071 = shalt.err (!%p2068_p6)
}
  0x4c   :  { %s2072_s24 = scalar_lea.vmem %s76_s30, 1024  ;;  %p2077_p8 = scmp.lt.s32.totalorder %s76_s30, %s76_s30 }
  0x4d   :  { %p2073_p7 = scmp.ne.s32.totalorder %s76_s30, %s2072_s24  ;;  %p2078_p9 = scmp.lt.s32.totalorder %s2072_s24, %s2072_s24 }
  0x4f   :  { %p2079_p10 = por %p2078_p9, %p2077_p8 }
  0x51   :  { %p2080_p11 = pnand %p2079_p10, %p2073_p7 }
  0x53   :  { %2083 = shalt.err (!%p2080_p11)
}
  0x54   :  { %81 = dma.hbm_to_vmem [thread:$0]  %s2294_s7, 1024, %s76_s30, [#allocation9], %s2119_s10, %s2119_s10, %s2120_s14  }
  0x55   :  { %2106 = dma.done.wait [#allocation3], 1024  }
  0x56   :  { %2107 = vsyncadd [#allocation3], 4294966272 }
  0x57   :  { %2108 = dma.done.wait [#allocation6], 18432  }
  0x58   :  { %2109 = vsyncadd [#allocation6], 4294948864 }
  0x59   :  { %2110 = dma.done.wait [#allocation9], 2048  }
  0x5a   :  { %2111 = vsyncadd [#allocation9], 4294965248  ;;  %v1750_v0 = vld [vmem:[#allocation5 + $0x104] ss:$8 sps:$4 sm:$0xff]   ;;  %v1752_v1 = vld [vmem:[#allocation5 + $0x100] ss:$8 sps:$4 sm:$0xff]  }
  0x5b   :  { %937 = vmatprep.subr.bf16.mxu0 %v1750_v0  ;;  %v1753_v2 = vld [vmem:[#allocation5 + $0x114] ss:$8 sps:$4 sm:$0xff]   ;;  %v1755_v3 = vld [vmem:[#allocation5 + $0x110] ss:$8 sps:$4 sm:$0xff]   ;;  %v1756_v4 = vld [vmem:[#allocation5 + $0x124] ss:$8 sps:$4 sm:$0xff]  }
  0x5c   :  { %938 = vmatpush1.bf16.msra.mxu0 %v1752_v1  ;;  %v1758_v5 = vld [vmem:[#allocation5 + $0x120] ss:$8 sps:$4 sm:$0xff]   ;;  %v1759_v6 = vld [vmem:[#allocation5 + $0x134] ss:$8 sps:$4 sm:$0xff]   ;;  %v1761_v7 = vld [vmem:[#allocation5 + $0x130] ss:$8 sps:$4 sm:$0xff]  }
  0x5d   :  { %939 = vmatprep.subr.bf16.mxu0 %v1753_v2  ;;  %v1762_v8 = vld [vmem:[#allocation5 + $0x144] ss:$8 sps:$4 sm:$0xff]   ;;  %v1764_v9 = vld [vmem:[#allocation5 + $0x140] ss:$8 sps:$4 sm:$0xff]   ;;  %v1765_v10 = vld [vmem:[#allocation5 + $0x154] ss:$8 sps:$4 sm:$0xff]  }
  0x5e   :  { %v1767_v11 = vld [vmem:[#allocation5 + $0x150] ss:$8 sps:$4 sm:$0xff]   ;;  %v1768_v12 = vld [vmem:[#allocation5 + $0x164] ss:$8 sps:$4 sm:$0xff]   ;;  %v1770_v15 = vld [vmem:[#allocation5 + $0x160] ss:$8 sps:$4 sm:$0xff]  }
  0x5f   :  { %v103_v13 = vld [vmem:[#allocation2 + $0x18] sm:$0xff]  ;;  %v1774_v18 = vld [vmem:[#allocation5 + $0x184] ss:$8 sps:$4 sm:$0xff]   ;;  %v1776_v19 = vld [vmem:[#allocation5 + $0x180] ss:$8 sps:$4 sm:$0xff]   ;;  %vm2124_vm0 = vmmov 0  }
  0x60   :  { %940 = vmatpush1.bf16.msra.mxu0 %v1755_v3  ;;  %v111_v14 = vpack.c.bf16 %v103_v13, %v103_v13  ;;  %v1771_v16 = vld [vmem:[#allocation5 + $0x174] ss:$8 sps:$4 sm:$0xff]   ;;  %v1773_v17 = vld [vmem:[#allocation5 + $0x170] ss:$8 sps:$4 sm:$0xff]   ;;  %v1780_v22 = vld [vmem:[#allocation5 + $0x1a4] ss:$8 sps:$4 sm:$0xff]  }
  0x61   :  { %941 = vmatprep.subr.bf16.mxu0 %v1756_v4  ;;  %v1777_v20 = vld [vmem:[#allocation5 + $0x194] ss:$8 sps:$4 sm:$0xff]   ;;  %v1779_v21 = vld [vmem:[#allocation5 + $0x190] ss:$8 sps:$4 sm:$0xff]   ;;  %v1782_v23 = vld [vmem:[#allocation5 + $0x1a0] ss:$8 sps:$4 sm:$0xff]  }
  0x62   :  { %969 = vmatprep.mubr.bf16.mxu0 %v111_v14  ;;  %v1783_v24 = vld [vmem:[#allocation5 + $0x1b4] ss:$8 sps:$4 sm:$0xff]   ;;  %v1785_v25 = vld [vmem:[#allocation5 + $0x1b0] ss:$8 sps:$4 sm:$0xff]   ;;  %v1843_v26 = vld [vmem:[#allocation5 + $0x4] ss:$8 sps:$4 sm:$0xff]  }
  0x63   :  { %v1845_v27 = vld [vmem:[#allocation5] ss:$8 sps:$4 sm:$0xff]   ;;  %v1786_v28 = vld [vmem:[#allocation5 + $0x1c4] ss:$8 sps:$4 sm:$0xff]   ;;  %896 = vmatprep.subr.bf16.mxu1 %v1843_v26  ;;  %v1849_v29 = vld [vmem:[#allocation5 + $0x14] ss:$8 sps:$4 sm:$0xff]  }
  0x64   :  { %942 = vmatpush1.bf16.msra.mxu0 %v1758_v5  ;;  %897 = vmatpush1.bf16.msra.mxu1 %v1845_v27  ;;  %v1851_v30 = vld [vmem:[#allocation5 + $0x10] ss:$8 sps:$4 sm:$0xff]   ;;  %v1788_v31 = vld [vmem:[#allocation5 + $0x1c0] ss:$8 sps:$4 sm:$0xff]   ;;  %v1789_v32 = vld [vmem:[#allocation5 + $0x1d4] ss:$8 sps:$4 sm:$0xff]  }
  0x65   :  { %943 = vmatprep.subr.bf16.mxu0 %v1759_v6  ;;  %898 = vmatprep.subr.bf16.mxu1 %v1849_v29  ;;  %v1855_v33 = vld [vmem:[#allocation5 + $0x24] ss:$8 sps:$4 sm:$0xff]   ;;  %v1857_v34 = vld [vmem:[#allocation5 + $0x20] ss:$8 sps:$4 sm:$0xff]   ;;  %v1791_v35 = vld [vmem:[#allocation5 + $0x1d0] ss:$8 sps:$4 sm:$0xff]  }
  0x66   :  { %v1861_v36 = vld [vmem:[#allocation5 + $0x34] ss:$8 sps:$4 sm:$0xff]   ;;  %v1792_v37 = vld [vmem:[#allocation5 + $0x1e4] ss:$8 sps:$4 sm:$0xff]   ;;  %v1863_v38 = vld [vmem:[#allocation5 + $0x30] ss:$8 sps:$4 sm:$0xff]  }
  0x67   :  { %v1867_v39 = vld [vmem:[#allocation5 + $0x44] ss:$8 sps:$4 sm:$0xff]   ;;  %v1794_v40 = vld [vmem:[#allocation5 + $0x1e0] ss:$8 sps:$4 sm:$0xff]   ;;  %v1795_v41 = vld [vmem:[#allocation5 + $0x1f4] ss:$8 sps:$4 sm:$0xff]  }
  0x68   :  { %944 = vmatpush1.bf16.msra.mxu0 %v1761_v7  ;;  %899 = vmatpush1.bf16.msra.mxu1 %v1851_v30  ;;  %v1869_v42 = vld [vmem:[#allocation5 + $0x40] ss:$8 sps:$4 sm:$0xff]   ;;  %v1797_v43 = vld [vmem:[#allocation5 + $0x1f0] ss:$8 sps:$4 sm:$0xff]   ;;  %v1873_v44 = vld [vmem:[#allocation5 + $0x54] ss:$8 sps:$4 sm:$0xff]  }
  0x69   :  { %945 = vmatprep.subr.bf16.mxu0 %v1762_v8  ;;  %900 = vmatprep.subr.bf16.mxu1 %v1855_v33  ;;  %v1800_v45 = vld [vmem:[#allocation5 + $0x204] ss:$8 sps:$4 sm:$0xff]   ;;  %v102_v46 = vld [vmem:[#allocation2 + $0x10] sm:$0xff]  ;;  %v1798_v51 = vld [vmem:[#allocation5 + $0x200] ss:$8 sps:$4 sm:$0xff]   ;;  %s2125_s11 = smov [#allocation11]  }
  0x6a   :  { %v105_v47 = vld [vmem:[#allocation2 + $0x28] sm:$0xff]  ;;  %v1875_v48 = vld [vmem:[#allocation5 + $0x50] ss:$8 sps:$4 sm:$0xff]   ;;  %v110_v49 = vpack.c.bf16 %v102_v46, %v102_v46  ;;  %v1803_v53 = vld [vmem:[#allocation5 + $0x214] ss:$8 sps:$4 sm:$0xff]   ;;  %s1472_s12 = sshll.u32 %s2125_s11, 4  ;;  %s1473_s12 = int_to_ptr.vmem [resolvable:$true] %s1472_s12 }
  0x6b   :  { %v1879_v50 = vld [vmem:[#allocation5 + $0x64] ss:$8 sps:$4 sm:$0xff]   ;;  %v113_v52 = vpack.c.bf16 %v105_v47, %v105_v47  ;;  %v1881_v54 = vld [vmem:[#allocation5 + $0x60] ss:$8 sps:$4 sm:$0xff]   ;;  %v1885_v55 = vld [vmem:[#allocation5 + $0x74] ss:$8 sps:$4 sm:$0xff]   ;;  %p2089_p13 = scmp.lt.s32.totalorder %s1473_s12, %s1473_s12 }
  0x6c   :  { %946 = vmatpush1.bf16.msra.mxu0 %v1764_v9  ;;  %901 = vmatpush1.bf16.msra.mxu1 %v1857_v34  ;;  %v1801_v56 = vld [vmem:[#allocation5 + $0x210] ss:$8 sps:$4 sm:$0xff]   ;;  %v1806_v57 = vld [vmem:[#allocation5 + $0x224] ss:$8 sps:$4 sm:$0xff]   ;;  %v1804_v60 = vld [vmem:[#allocation5 + $0x220] ss:$8 sps:$4 sm:$0xff]  }
  0x6d   :  { %947 = vmatprep.subr.bf16.mxu0 %v1765_v10  ;;  %902 = vmatprep.subr.bf16.mxu1 %v1861_v36  ;;  %v1887_v58 = vld [vmem:[#allocation5 + $0x70] ss:$8 sps:$4 sm:$0xff]   ;;  %v1891_v59 = vld [vmem:[#allocation5 + $0x84] ss:$8 sps:$4 sm:$0xff]   ;;  %v1809_v61 = vld [vmem:[#allocation5 + $0x234] ss:$8 sps:$4 sm:$0xff]  }
  0x6e   :  { %v1893_v62 = vld [vmem:[#allocation5 + $0x80] ss:$8 sps:$4 sm:$0xff]   ;;  %v1897_v63 = vld [vmem:[#allocation5 + $0x94] ss:$8 sps:$4 sm:$0xff]   ;;  %v1807_v0 = vld [vmem:[#allocation5 + $0x230] ss:$8 sps:$4 sm:$0xff]  }
  0x6f   :  { %v1812_v1 = vld [vmem:[#allocation5 + $0x244] ss:$8 sps:$4 sm:$0xff]   ;;  %v1899_v2 = vld [vmem:[#allocation5 + $0x90] ss:$8 sps:$4 sm:$0xff]   ;;  %v1810_v4 = vld [vmem:[#allocation5 + $0x240] ss:$8 sps:$4 sm:$0xff]  }
  0x70   :  { %948 = vmatpush1.bf16.msra.mxu0 %v1767_v11  ;;  %903 = vmatpush1.bf16.msra.mxu1 %v1863_v38  ;;  %v1903_v3 = vld [vmem:[#allocation5 + $0xa4] ss:$8 sps:$4 sm:$0xff]   ;;  %v1815_v5 = vld [vmem:[#allocation5 + $0x254] ss:$8 sps:$4 sm:$0xff]   ;;  %v1905_v6 = vld [vmem:[#allocation5 + $0xa0] ss:$8 sps:$4 sm:$0xff]  }
  0x71   :  { %949 = vmatprep.subr.bf16.mxu0 %v1768_v12  ;;  %904 = vmatprep.subr.bf16.mxu1 %v1867_v39  ;;  %v1909_v7 = vld [vmem:[#allocation5 + $0xb4] ss:$8 sps:$4 sm:$0xff]   ;;  %v1813_v8 = vld [vmem:[#allocation5 + $0x250] ss:$8 sps:$4 sm:$0xff]   ;;  %v1818_v9 = vld [vmem:[#allocation5 + $0x264] ss:$8 sps:$4 sm:$0xff]  }
  0x72   :  { %v1911_v10 = vld [vmem:[#allocation5 + $0xb0] ss:$8 sps:$4 sm:$0xff]   ;;  %v101_v11 = vld [vmem:[#allocation2 + $0x8] sm:$0xff]  ;;  %v1933_v27 = vld [vmem:[#allocation5 + $0xf4] ss:$8 sps:$4 sm:$0xff]  }
  0x73   :  { %v1915_v12 = vld [vmem:[#allocation5 + $0xc4] ss:$8 sps:$4 sm:$0xff]   ;;  %v109_v13 = vpack.c.bf16 %v101_v11, %v101_v11  ;;  %v1816_v14 = vld [vmem:[#allocation5 + $0x260] ss:$8 sps:$4 sm:$0xff]   ;;  %v1831_v36 = vld [vmem:[#allocation5 + $0x2b0] ss:$8 sps:$4 sm:$0xff]  }
  0x74   :  { %950 = vmatpush1.bf16.msra.mxu0 %v1770_v15  ;;  %905 = vmatpush1.bf16.msra.mxu1 %v1869_v42  ;;  %v1821_v15 = vld [vmem:[#allocation5 + $0x274] ss:$8 sps:$4 sm:$0xff]   ;;  %v1830_v26 = vld [vmem:[#allocation5 + $0x2a4] ss:$8 sps:$4 sm:$0xff]   ;;  %v1906_v11 = vld [vmem:[#allocation5 + $0x390] ss:$8 sps:$4 sm:$0xff]  }
  0x75   :  { %951 = vmatprep.subr.bf16.mxu0 %v1771_v16  ;;  %906 = vmatprep.subr.bf16.mxu1 %v1873_v44  ;;  %v1917_v16 = vld [vmem:[#allocation5 + $0xc0] ss:$8 sps:$4 sm:$0xff]   ;;  %v1946_v39 = vld [vmem:[#allocation7 + $0x50] sm:$0xff]   ;;  %v1949_v46 = vld [vmem:[#allocation7 + $0x18] sm:$0xff]  }
  0x76   :  { %928 = vmatprep.mubr.bf16.mxu1 %v109_v13  ;;  %v100_v29 = vld [vmem:[#allocation2] sm:$0xff]  ;;  %v1945_v38 = vld [vmem:[#allocation7 + $0x8] sm:$0xff]   ;;  %v1947_v42 = vld [vmem:[#allocation7 + $0x10] sm:$0xff]  }
  0x77   :  { %v1942_v30 = vld [vmem:[#allocation7 + $0x40] sm:$0xff]   ;;  %v108_v34 = vpack.c.bf16 %v100_v29, %v100_v29  ;;  %v1837_v44 = vld [vmem:[#allocation5 + $0x2d0] ss:$8 sps:$4 sm:$0xff]  }
  0x78   :  { %952 = vmatpush1.bf16.msra.mxu0 %v1773_v17  ;;  %907 = vmatpush1.bf16.msra.mxu1 %v1875_v48  ;;  %v1921_v17 = vld [vmem:[#allocation5 + $0xd4] ss:$8 sps:$4 sm:$0xff]   ;;  %v1943_v33 = vld [vmem:[#allocation7] sm:$0xff]  }
  0x79   :  { %953 = vmatprep.subr.bf16.mxu0 %v1774_v18  ;;  %908 = vmatprep.subr.bf16.mxu1 %v1879_v50  ;;  %v1819_v18 = vld [vmem:[#allocation5 + $0x270] ss:$8 sps:$4 sm:$0xff]   ;;  %v1950_v47 = vld [vmem:[#allocation7 + $0x60] sm:$0xff]  }
  0x7a   :  { %v1840_v48 = vld [vmem:[#allocation5 + $0x2e0] ss:$8 sps:$4 sm:$0xff]   ;;  %v1955_v29 = vld [vmem:[#allocation7 + $0x30] sm:$0xff]  }
  0x7b   :  { %v1951_v50 = vld [vmem:[#allocation7 + $0x20] sm:$0xff]  }
  0x7c   :  { %954 = vmatpush1.bf16.msra.mxu0 %v1776_v19  ;;  %909 = vmatpush1.bf16.msra.mxu1 %v1881_v54  ;;  %v1824_v19 = vld [vmem:[#allocation5 + $0x284] ss:$8 sps:$4 sm:$0xff]   ;;  %v107_v54 = vld [vmem:[#allocation2 + $0x38] sm:$0xff]  ;;  %v1912_v13 = vld [vmem:[#allocation5 + $0x3a0] ss:$8 sps:$4 sm:$0xff]  }
  0x7d   :  { %955 = vmatprep.subr.bf16.mxu0 %v1777_v20  ;;  %910 = vmatprep.subr.bf16.mxu1 %v1885_v55  ;;  %v1923_v20 = vld [vmem:[#allocation5 + $0xd0] ss:$8 sps:$4 sm:$0xff]  }
  0x80   :  { %956 = vmatpush1.bf16.msra.mxu0 %v1779_v21  ;;  %911 = vmatpush1.bf16.msra.mxu1 %v1887_v58  ;;  %v1927_v21 = vld [vmem:[#allocation5 + $0xe4] ss:$8 sps:$4 sm:$0xff]   ;;  %v1860_v58 = vld [vmem:[#allocation5 + $0x314] ss:$8 sps:$4 sm:$0xff]  }
  0x81   :  { %957 = vmatprep.subr.bf16.mxu0 %v1780_v22  ;;  %912 = vmatprep.subr.bf16.mxu1 %v1891_v59  ;;  %v1822_v22 = vld [vmem:[#allocation5 + $0x280] ss:$8 sps:$4 sm:$0xff]   ;;  %v1858_v59 = vld [vmem:[#allocation5 + $0x310] ss:$8 sps:$4 sm:$0xff]  }
  0x84   :  { %958 = vmatpush1.bf16.msra.mxu0 %v1782_v23  ;;  %913 = vmatpush1.bf16.msra.mxu1 %v1893_v62  ;;  %v1827_v23 = vld [vmem:[#allocation5 + $0x294] ss:$8 sps:$4 sm:$0xff]  }
  0x85   :  { %959 = vmatprep.subr.bf16.mxu0 %v1783_v24  ;;  %914 = vmatprep.subr.bf16.mxu1 %v1897_v63  ;;  %v1825_v24 = vld [vmem:[#allocation5 + $0x290] ss:$8 sps:$4 sm:$0xff]   ;;  %v1872_v62 = vld [vmem:[#allocation5 + $0x334] ss:$8 sps:$4 sm:$0xff]  }
  0x86   :  { %v1870_v63 = vld [vmem:[#allocation5 + $0x330] ss:$8 sps:$4 sm:$0xff]  }
  0x88   :  { %960 = vmatpush1.bf16.msra.mxu0 %v1785_v25  ;;  %915 = vmatpush1.bf16.msra.mxu1 %v1899_v2  ;;  %v1929_v25 = vld [vmem:[#allocation5 + $0xe0] ss:$8 sps:$4 sm:$0xff]   ;;  %v1884_v2 = vld [vmem:[#allocation5 + $0x354] ss:$8 sps:$4 sm:$0xff]  }
  0x89   :  { %961 = vmatprep.subr.bf16.mxu0 %v1786_v28  ;;  %916 = vmatprep.subr.bf16.mxu1 %v1903_v3  ;;  %v1935_v28 = vld [vmem:[#allocation5 + $0xf0] ss:$8 sps:$4 sm:$0xff]  }
  0x8a   :  { %v1882_v3 = vld [vmem:[#allocation5 + $0x350] ss:$8 sps:$4 sm:$0xff]  }
  0x8c   :  { %962 = vmatpush1.bf16.msra.mxu0 %v1788_v31  ;;  %917 = vmatpush1.bf16.msra.mxu1 %v1905_v6  ;;  %v1828_v31 = vld [vmem:[#allocation5 + $0x2a0] ss:$8 sps:$4 sm:$0xff]   ;;  %v1896_v6 = vld [vmem:[#allocation5 + $0x374] ss:$8 sps:$4 sm:$0xff]  }
  0x8d   :  { %963 = vmatprep.subr.bf16.mxu0 %v1789_v32  ;;  %918 = vmatprep.subr.bf16.mxu1 %v1909_v7  ;;  %v1833_v32 = vld [vmem:[#allocation5 + $0x2b4] ss:$8 sps:$4 sm:$0xff]   ;;  %v1894_v7 = vld [vmem:[#allocation5 + $0x370] ss:$8 sps:$4 sm:$0xff]  }
  0x90   :  { %964 = vmatpush1.bf16.msra.mxu0 %v1791_v35  ;;  %919 = vmatpush1.bf16.msra.mxu1 %v1911_v10  ;;  %v1944_v35 = vld [vmem:[#allocation7 + $0x48] sm:$0xff]   ;;  %v1908_v10 = vld [vmem:[#allocation5 + $0x394] ss:$8 sps:$4 sm:$0xff]  }
  0x91   :  { %965 = vmatprep.subr.bf16.mxu0 %v1792_v37  ;;  %920 = vmatprep.subr.bf16.mxu1 %v1915_v12  ;;  %v1836_v37 = vld [vmem:[#allocation5 + $0x2c4] ss:$8 sps:$4 sm:$0xff]  }
  0x92   :  { %v1914_v12 = vld [vmem:[#allocation5 + $0x3a4] ss:$8 sps:$4 sm:$0xff]  }
  0x94   :  { %966 = vmatpush1.bf16.msra.mxu0 %v1794_v40  ;;  %921 = vmatpush1.bf16.msra.mxu1 %v1917_v16  ;;  %v1834_v40 = vld [vmem:[#allocation5 + $0x2c0] ss:$8 sps:$4 sm:$0xff]   ;;  %v1926_v16 = vld [vmem:[#allocation5 + $0x3c4] ss:$8 sps:$4 sm:$0xff]  }
  0x95   :  { %967 = vmatprep.subr.bf16.mxu0 %v1795_v41  ;;  %922 = vmatprep.subr.bf16.mxu1 %v1921_v17  ;;  %v1839_v41 = vld [vmem:[#allocation5 + $0x2d4] ss:$8 sps:$4 sm:$0xff]   ;;  %v1924_v17 = vld [vmem:[#allocation5 + $0x3c0] ss:$8 sps:$4 sm:$0xff]  }
  0x98   :  { %968 = vmatpush1.bf16.msra.mxu0 %v1797_v43  ;;  %923 = vmatpush1.bf16.msra.mxu1 %v1923_v20  ;;  %v1948_v43 = vld [vmem:[#allocation7 + $0x58] sm:$0xff]   ;;  %v1938_v20 = vld [vmem:[#allocation5 + $0x3e4] ss:$8 sps:$4 sm:$0xff]  }
  0x99   :  { %978 = vmatprep.subr.bf16.mxu0 %v1800_v45  ;;  %924 = vmatprep.subr.bf16.mxu1 %v1927_v21  ;;  %v1842_v45 = vld [vmem:[#allocation5 + $0x2e4] ss:$8 sps:$4 sm:$0xff]   ;;  %v1936_v21 = vld [vmem:[#allocation5 + $0x3e0] ss:$8 sps:$4 sm:$0xff]  }
  0x9b   :  { %970 = vmatmul.mubr.bf16.vlgmr.msra.gmra.mrb[0].mxu0 %v110_v49  ;;  %v1848_v49 = vld [vmem:[#allocation5 + $0x2f4] ss:$8 sps:$4 sm:$0xff]  }
  0x9c   :  { %979 = vmatpush1.bf16.msra.mxu0 %v1798_v51  ;;  %1010 = vmatprep.mubr.bf16.mxu0 %v113_v52  ;;  %v1846_v51 = vld [vmem:[#allocation5 + $0x2f0] ss:$8 sps:$4 sm:$0xff]   ;;  %v104_v52 = vld [vmem:[#allocation2 + $0x20] sm:$0xff] }
  0x9d   :  { %980 = vmatprep.subr.bf16.mxu0 %v1803_v53  ;;  %925 = vmatpush1.bf16.msra.mxu1 %v1929_v25  ;;  %v1854_v53 = vld [vmem:[#allocation5 + $0x304] ss:$8 sps:$4 sm:$0xff]   ;;  %v112_v55 = vpack.c.bf16 %v104_v52, %v104_v52 }
  0x9e   :  { %926 = vmatprep.subr.bf16.mxu1 %v1933_v27  ;;  %v1953_v27 = vld [vmem:[#allocation7 + $0x28] sm:$0xff]  }
  0xa0   :  { %981 = vmatpush1.bf16.msra.mxu0 %v1801_v56  ;;  %v1852_v56 = vld [vmem:[#allocation5 + $0x300] ss:$8 sps:$4 sm:$0xff]  }
  0xa1   :  { %982 = vmatprep.subr.bf16.mxu0 %v1806_v57  ;;  %927 = vmatpush1.bf16.msra.mxu1 %v1935_v28  ;;  %v115_v57 = vpack.c.bf16 %v107_v54, %v107_v54  ;;  %v1954_v28 = vld [vmem:[#allocation7 + $0x70] sm:$0xff]  }
  0xa2   :  { %1646 = vmatprep.subr.bf16.mxu1 %v1942_v30  ;;  %v1956_v30 = vld [vmem:[#allocation7 + $0x78] sm:$0xff]  }
  0xa4   :  { %983 = vmatpush1.bf16.msra.mxu0 %v1804_v60  ;;  %929 = vmatmul.mubr.bf16.vlgmr.msra.gmra.mrb[0].mxu1 %v108_v34  ;;  %v1866_v60 = vld [vmem:[#allocation5 + $0x324] ss:$8 sps:$4 sm:$0xff]  }
  0xa5   :  { %984 = vmatprep.subr.bf16.mxu0 %v1809_v61  ;;  %1647 = vmatpush3.bf16.msra.mxu1 %v1943_v33  ;;  %v1864_v61 = vld [vmem:[#allocation5 + $0x320] ss:$8 sps:$4 sm:$0xff]  }
  0xa6   :  { %1648 = vmatprep.subr.bf16.mxu1 %v1944_v35 }
  0xa8   :  { %985 = vmatpush1.bf16.msra.mxu0 %v1807_v0  ;;  %v1878_v0 = vld [vmem:[#allocation5 + $0x344] ss:$8 sps:$4 sm:$0xff]  }
  0xa9   :  { %986 = vmatprep.subr.bf16.mxu0 %v1812_v1  ;;  %1649 = vmatpush3.bf16.msra.mxu1 %v1945_v38  ;;  %v1876_v1 = vld [vmem:[#allocation5 + $0x340] ss:$8 sps:$4 sm:$0xff]  }
  0xaa   :  { %1650 = vmatprep.subr.bf16.mxu1 %v1946_v39 }
  0xac   :  { %987 = vmatpush1.bf16.msra.mxu0 %v1810_v4  ;;  %v1890_v4 = vld [vmem:[#allocation5 + $0x364] ss:$8 sps:$4 sm:$0xff]  }
  0xad   :  { %988 = vmatprep.subr.bf16.mxu0 %v1815_v5  ;;  %1651 = vmatpush3.bf16.msra.mxu1 %v1947_v42  ;;  %v1888_v5 = vld [vmem:[#allocation5 + $0x360] ss:$8 sps:$4 sm:$0xff]  }
  0xae   :  { %1652 = vmatprep.subr.bf16.mxu1 %v1948_v43 }
  0xb0   :  { %989 = vmatpush1.bf16.msra.mxu0 %v1813_v8  ;;  %v1902_v8 = vld [vmem:[#allocation5 + $0x384] ss:$8 sps:$4 sm:$0xff]  }
  0xb1   :  { %990 = vmatprep.subr.bf16.mxu0 %v1818_v9  ;;  %1653 = vmatpush3.bf16.msra.mxu1 %v1949_v46  ;;  %v1900_v9 = vld [vmem:[#allocation5 + $0x380] ss:$8 sps:$4 sm:$0xff]  }
  0xb2   :  { %1654 = vmatprep.subr.bf16.mxu1 %v1950_v47 }
  0xb4   :  { %991 = vmatpush1.bf16.msra.mxu0 %v1816_v14  ;;  %v1920_v14 = vld [vmem:[#allocation5 + $0x3b4] ss:$8 sps:$4 sm:$0xff]  }
  0xb5   :  { %992 = vmatprep.subr.bf16.mxu0 %v1821_v15  ;;  %1655 = vmatpush3.bf16.msra.mxu1 %v1951_v50  ;;  %v1918_v15 = vld [vmem:[#allocation5 + $0x3b0] ss:$8 sps:$4 sm:$0xff]  }
  0xb8   :  { %993 = vmatpush1.bf16.msra.mxu0 %v1819_v18  ;;  %v1932_v18 = vld [vmem:[#allocation5 + $0x3d4] ss:$8 sps:$4 sm:$0xff]  }
  0xb9   :  { %994 = vmatprep.subr.bf16.mxu0 %v1824_v19  ;;  %v1930_v19 = vld [vmem:[#allocation5 + $0x3d0] ss:$8 sps:$4 sm:$0xff]  }
  0xbc   :  { %995 = vmatpush1.bf16.msra.mxu0 %v1822_v22  ;;  %v1941_v22 = vld [vmem:[#allocation5 + $0x3f4] ss:$8 sps:$4 sm:$0xff]  }
  0xbd   :  { %996 = vmatprep.subr.bf16.mxu0 %v1827_v23  ;;  %v1939_v23 = vld [vmem:[#allocation5 + $0x3f0] ss:$8 sps:$4 sm:$0xff]  }
  0xc0   :  { %997 = vmatpush1.bf16.msra.mxu0 %v1825_v24  ;;  %v106_v24 = vld [vmem:[#allocation2 + $0x30] sm:$0xff] }
  0xc1   :  { %998 = vmatprep.subr.bf16.mxu0 %v1830_v26  ;;  %v114_v25 = vpack.c.bf16 %v106_v24, %v106_v24  ;;  %v1952_v26 = vld [vmem:[#allocation7 + $0x68] sm:$0xff]  }
  0xc2   :  { %1656 = vmatprep.subr.bf16.mxu1 %v1952_v26 }
  0xc3   :  { %1657 = vmatpush3.bf16.msra.mxu1 %v1953_v27 }
  0xc4   :  { %999 = vmatpush1.bf16.msra.mxu0 %v1828_v31  ;;  %1658 = vmatprep.subr.bf16.mxu1 %v1954_v28  ;;  %v1957_v31 = vld [vmem:[#allocation7 + $0x38] sm:$0xff]  }
  0xc5   :  { %1000 = vmatprep.subr.bf16.mxu0 %v1833_v32  ;;  %v2123_v32 = vmov 0.0  }
  0xc7   :  { %1659 = vmatpush3.bf16.msra.mxu1 %v1955_v29 }
  0xc8   :  { %1001 = vmatpush1.bf16.msra.mxu0 %v1831_v36  ;;  %1660 = vmatprep.subr.bf16.mxu1 %v1956_v30 }
  0xc9   :  { %1002 = vmatprep.subr.bf16.mxu0 %v1836_v37  ;;  %v246_v37 = vlaneseq }
  0xcb   :  { %1661 = vmatpush3.bf16.msra.mxu1 %v1957_v31  ;;  %v247_v38 = vshrl.u32 %v246_v37, 7 }
  0xcc   :  { %1003 = vmatpush1.bf16.msra.mxu0 %v1834_v40  ;;  %1686 = vmatprep.subr.bf16.mxu1 %v2123_v32  ;;  %v244_v40 = vld [vmem:[%s2289_s2] sm:$0x3] }
  0xcd   :  { %1004 = vmatprep.subr.bf16.mxu0 %v1839_v41  ;;  %v248_v39 = vsub.s32 0, %v247_v38  ;;  %v252_v41 = vsub.s32 1, %v247_v38 }
  0xcf   :  { %v249_v42 = vrot.slane %v244_v40, %v248_v39  ;;  %v253_v43 = vrot.slane %v244_v40, %v252_v41 }
  0xd0   :  { %1005 = vmatpush1.bf16.msra.mxu0 %v1837_v44 }
  0xd1   :  { %1006 = vmatprep.subr.bf16.mxu0 %v1842_v45 }
  0xd4   :  { %1007 = vmatpush1.bf16.msra.mxu0 %v1840_v48 }
  0xd5   :  { %1008 = vmatprep.subr.bf16.mxu0 %v1848_v49 }
  0xd8   :  { %1009 = vmatpush1.bf16.msra.mxu0 %v1846_v51 }
  0xd9   :  { %1019 = vmatprep.subr.bf16.mxu0 %v1854_v53 }
  0xdb   :  { %1011 = vmatmul.mubr.bf16.vlgmr.msra.gmra.mrb[0].mxu0 %v112_v55  ;;  %v1958_v55 = vld [vmem:[#allocation8] sm:$0xff]  }
  0xdc   :  { %1020 = vmatpush1.bf16.msra.mxu0 %v1852_v56  ;;  %1051 = vmatprep.mubr.bf16.mxu0 %v115_v57  ;;  %v1959_v57 = vld [vmem:[#allocation8 + $0x8] sm:$0xff]  }
  0xdd   :  { %1021 = vmatprep.subr.bf16.mxu0 %v1860_v58  ;;  %v1960_v58 = vld [vmem:[#allocation8 + $0x10] sm:$0xff]  }
  0xe0   :  { %1022 = vmatpush1.bf16.msra.mxu0 %v1858_v59  ;;  %v1961_v59 = vld [vmem:[#allocation8 + $0x18] sm:$0xff]  }
  0xe1   :  { %1023 = vmatprep.subr.bf16.mxu0 %v1866_v60  ;;  %v1962_v60 = vld [vmem:[#allocation8 + $0x20] sm:$0xff]  }
  0xe4   :  { %1024 = vmatpush1.bf16.msra.mxu0 %v1864_v61  ;;  %v1963_v61 = vld [vmem:[#allocation8 + $0x28] sm:$0xff]  }
  0xe5   :  { %1025 = vmatprep.subr.bf16.mxu0 %v1872_v62  ;;  %v1964_v62 = vld [vmem:[#allocation8 + $0x30] sm:$0xff]  }
  0xe8   :  { %1026 = vmatpush1.bf16.msra.mxu0 %v1870_v63  ;;  %v1965_v63 = vld [vmem:[#allocation8 + $0x38] sm:$0xff]  }
  0xe9   :  { %1027 = vmatprep.subr.bf16.mxu0 %v1878_v0 }
  0xec   :  { %1028 = vmatpush1.bf16.msra.mxu0 %v1876_v1  ;;  %v1611_v1 = vld [vmem:[%s2291_s4] ss:$0 sm:$0xff] }
  0xed   :  { %1029 = vmatprep.subr.bf16.mxu0 %v1884_v2 }
  0xf0   :  { %1030 = vmatpush1.bf16.msra.mxu0 %v1882_v3 }
  0xf1   :  { %1031 = vmatprep.subr.bf16.mxu0 %v1890_v4 }
  0xf4   :  { %1032 = vmatpush1.bf16.msra.mxu0 %v1888_v5 }
  0xf5   :  { %1033 = vmatprep.subr.bf16.mxu0 %v1896_v6 }
  0xf8   :  { %1034 = vmatpush1.bf16.msra.mxu0 %v1894_v7 }
  0xf9   :  { %1035 = vmatprep.subr.bf16.mxu0 %v1902_v8  ;;  %v1966_v8 = vld [vmem:[#allocation10] sm:$0xff]  }
  0xfc   :  { %1036 = vmatpush1.bf16.msra.mxu0 %v1900_v9 }
  0xfd   :  { %1037 = vmatprep.subr.bf16.mxu0 %v1908_v10  ;;  %v1967_v10 = vld [vmem:[#allocation10 + $0x8] sm:$0xff]  }
 0x100   :  { %1038 = vmatpush1.bf16.msra.mxu0 %v1906_v11  ;;  %v1968_v11 = vld [vmem:[#allocation10 + $0x10] sm:$0xff]  }
 0x101   :  { %1039 = vmatprep.subr.bf16.mxu0 %v1914_v12  ;;  %v1969_v12 = vld [vmem:[#allocation10 + $0x18] sm:$0xff]  }
 0x104   :  { %1040 = vmatpush1.bf16.msra.mxu0 %v1912_v13  ;;  %v1970_v13 = vld [vmem:[#allocation10 + $0x20] sm:$0xff]  }
 0x105   :  { %1041 = vmatprep.subr.bf16.mxu0 %v1920_v14  ;;  %v1971_v14 = vld [vmem:[#allocation10 + $0x28] sm:$0xff]  }
 0x108   :  { %1042 = vmatpush1.bf16.msra.mxu0 %v1918_v15  ;;  %v1972_v15 = vld [vmem:[#allocation10 + $0x30] sm:$0xff]  }
 0x109   :  { %1043 = vmatprep.subr.bf16.mxu0 %v1926_v16  ;;  %v1973_v16 = vld [vmem:[#allocation10 + $0x38] sm:$0xff]  }
 0x10c   :  { %1044 = vmatpush1.bf16.msra.mxu0 %v1924_v17  ;;  %v1628_v17 = vld [vmem:[%s2293_s6] ss:$0 sm:$0xff]  ;;  %s2084_s6 = scalar_lea.vmem %s1473_s12, 128 }
 0x10d   :  { %1045 = vmatprep.subr.bf16.mxu0 %v1932_v18  ;;  %p2085_p12 = scmp.ne.s32.totalorder %s1473_s12, %s2084_s6  ;;  %p2090_p0 = scmp.lt.s32.totalorder %s2084_s6, %s2084_s6 }
 0x10f   :  { %p2091_p1 = por %p2090_p0, %p2089_p13 }
 0x110   :  { %1046 = vmatpush1.bf16.msra.mxu0 %v1930_v19 }
 0x111   :  { %1047 = vmatprep.subr.bf16.mxu0 %v1938_v20  ;;  %p2092_p2 = pnand %p2091_p1, %p2085_p12 }
 0x114   :  { %1048 = vmatpush1.bf16.msra.mxu0 %v1936_v21 }
 0x115   :  { %1049 = vmatprep.subr.bf16.mxu0 %v1941_v22 }
 0x118   :  { %1050 = vmatpush1.bf16.msra.mxu0 %v1939_v23 }
 0x11b   :  { %1052 = vmatmul.mubr.bf16.vlgmr.msra.gmra.mrb[0].mxu0 %v114_v25  ;;  %v1637_v25 = vld [vmem:[%s2295_s8] ss:$0 sm:$0xff] }
 0x177   :  { %v930_v33 = vpop.f32.mrb[0].mxu1 }
 0x178   :  { %v932_v34 = vpop.f32.mrb[1].mxu1  ;;  %v931_v44 = vadd.f32 %v930_v33, %v249_v42 }
 0x179   :  { %v934_v35 = vpop.f32.mrb[2].mxu1  ;;  %v933_v45 = vadd.f32 %v932_v34, %v253_v43 }
 0x17a   :  { %v935_v36 = vpop.f32.mrb[3].mxu1 }
 0x1ee   :  { %v1053_v46 = vpop.f32.mrb[0].mxu0 }
 0x1ef   :  { %v1727_v47 = vadd.f32 %v1053_v46, %v931_v44  ;;  %v1055_v48 = vpop.f32.mrb[1].mxu0 }
 0x1f0   :  { %v1729_v49 = vadd.f32 %v1055_v48, %v933_v45  ;;  %v1057_v50 = vpop.f32.mrb[2].mxu0 }
 0x1f1   :  { %v1060_v51 = vmax.f32 %v1727_v47, 0.0  ;;  %v1058_v52 = vpop.f32.mrb[3].mxu0 }
 0x1f2   :  { %v1061_v53 = vmax.f32 %v1729_v49, 0.0 }
 0x1f3   :  { %v1062_v56 = vpack.c.bf16 %v1060_v51, %v1060_v51 }
 0x1f4   :  { %v1063_v54 = vpack.c.bf16 %v1061_v53, %v1061_v53 }
 0x1f6   :  { %1231 = vmatprep.mubr.bf16.mxu1 %v1063_v54 }
 0x1f7   :  { %1232 = vmatmul.mubr.bf16.vlgmr.msra.gmra.mrb[4].mxu1 %v1062_v56 }
 0x1f8   :  { %1687 = vmatpush3.bf16.msra.mxu1 %v1958_v55  ;;  %1702 = vmatprep.mubr.msk.bf16.mxu1 %vm2124_vm0, %v2123_v32 }
 0x1f9   :  { %1688 = vmatprep.subr.bf16.mxu1 %v2123_v32 }
 0x1fc   :  { %1689 = vmatpush3.bf16.msra.mxu1 %v1959_v57 }
 0x1fd   :  { %1690 = vmatprep.subr.bf16.mxu1 %v2123_v32 }
 0x200   :  { %1691 = vmatpush3.bf16.msra.mxu1 %v1960_v58 }
 0x201   :  { %1692 = vmatprep.subr.bf16.mxu1 %v2123_v32 }
 0x204   :  { %1693 = vmatpush3.bf16.msra.mxu1 %v1961_v59 }
 0x205   :  { %1694 = vmatprep.subr.bf16.mxu1 %v2123_v32 }
 0x208   :  { %1695 = vmatpush3.bf16.msra.mxu1 %v1962_v60 }
 0x209   :  { %1696 = vmatprep.subr.bf16.mxu1 %v2123_v32 }
 0x20c   :  { %1697 = vmatpush3.bf16.msra.mxu1 %v1963_v61 }
 0x20d   :  { %1698 = vmatprep.subr.bf16.mxu1 %v2123_v32 }
 0x210   :  { %1699 = vmatpush3.bf16.msra.mxu1 %v1964_v62 }
 0x211   :  { %1700 = vmatprep.subr.bf16.mxu1 %v2123_v32 }
 0x214   :  { %1701 = vmatpush3.bf16.msra.mxu1 %v1965_v63 }
 0x215   :  { %1706 = vmatprep.subr.bf16.mxu1 %v2123_v32 }
 0x2ca   :  { %v1662_v0 = vpop.f32.mrb[4].mxu1 }
 0x2cb   :  { %v1663_v2 = vpop.f32.mrb[5].mxu1 }
 0x2cc   :  { %v1664_v3 = vadd.f32 %v1663_v2, %v1662_v0  ;;  %v1665_v4 = vpop.f32.mrb[6].mxu1 }
 0x2cd   :  { %v1666_v5 = vpop.f32.mrb[7].mxu1 }
 0x2ce   :  { %v1234_v6 = vadd.f32 %v1664_v3, %v1611_v1 }
 0x2d0   :  { %v1239_v7 = vmax.f32 %v1234_v6, 0.0 }
 0x2d2   :  { %v1240_v9 = vpack.c.bf16 %v1239_v7, %v1239_v7 }
 0x2d4   :  { %1703 = vmatmul.mubr.bf16.vlgmr.msra.gmra.mrb[8].mxu1 %v1240_v9 }
 0x2d5   :  { %1707 = vmatpush3.bf16.msra.mxu1 %v1966_v8  ;;  %1722 = vmatprep.mubr.msk.bf16.mxu1 %vm2124_vm0, %v2123_v32 }
 0x2d6   :  { %1708 = vmatprep.subr.bf16.mxu1 %v2123_v32 }
 0x2d9   :  { %1709 = vmatpush3.bf16.msra.mxu1 %v1967_v10 }
 0x2da   :  { %1710 = vmatprep.subr.bf16.mxu1 %v2123_v32 }
 0x2dd   :  { %1711 = vmatpush3.bf16.msra.mxu1 %v1968_v11 }
 0x2de   :  { %1712 = vmatprep.subr.bf16.mxu1 %v2123_v32 }
 0x2e1   :  { %1713 = vmatpush3.bf16.msra.mxu1 %v1969_v12 }
 0x2e2   :  { %1714 = vmatprep.subr.bf16.mxu1 %v2123_v32 }
 0x2e5   :  { %1715 = vmatpush3.bf16.msra.mxu1 %v1970_v13 }
 0x2e6   :  { %1716 = vmatprep.subr.bf16.mxu1 %v2123_v32 }
 0x2e9   :  { %1717 = vmatpush3.bf16.msra.mxu1 %v1971_v14 }
 0x2ea   :  { %1718 = vmatprep.subr.bf16.mxu1 %v2123_v32 }
 0x2ed   :  { %1719 = vmatpush3.bf16.msra.mxu1 %v1972_v15 }
 0x2ee   :  { %1720 = vmatprep.subr.bf16.mxu1 %v2123_v32 }
 0x2f1   :  { %1721 = vmatpush3.bf16.msra.mxu1 %v1973_v16 }
 0x3a7   :  { %v1346_v18 = vpop.f32.mrb[8].mxu1 }
 0x3a8   :  { %v1347_v19 = vadd.f32 %v1628_v17, %v1346_v18  ;;  %v1704_v20 = vpop.f32.mrb[9].mxu1 }
 0x3a9   :  { %v1349_v21 = vpop.f32.mrb[10].mxu1 }
 0x3aa   :  { %v1352_v22 = vmax.f32 %v1347_v19, 0.0  ;;  %v1705_v23 = vpop.f32.mrb[11].mxu1 }
 0x3ac   :  { %v1353_v24 = vpack.c.bf16 %v1352_v22, %v1352_v22 }
 0x3ae   :  { %1723 = vmatmul.mubr.bf16.vlgmr.msra.gmra.mrb[12].mxu1 %v1353_v24 }
 0x481   :  { %v1459_v26 = vpop.f32.mrb[12].mxu1 }
 0x482   :  { %v1460_v27 = vadd.f32 %v1637_v25, %v1459_v26  ;;  %v1724_v28 = vpop.f32.mrb[13].mxu1 }
 0x483   :  { %v1462_v29 = vpop.f32.mrb[14].mxu1 }
 0x484   :  { %1465 = vst [vmem:[#allocation11] sm:$0xff] %v1460_v27  ;;  %v1725_v30 = vpop.f32.mrb[15].mxu1 }
 0x485   :  { %2095 = shalt.err (!%p2092_p2)
}
 0x486   :  { %s2096_s8 = scalar_lea.hbm %s2296_s9, 128 }
 0x487   :  { %p2097_p3 = scmp.ne.s32.totalorder %s2296_s9, %s2096_s8  ;;  %p2100_p4 = scmp.lt.u32.totalorder %s2096_s8, %s2296_s9 }
 0x489   :  { %p2102_p5 = pnand %p2100_p4, %p2097_p3 }
 0x48b   :  { %2105 = shalt.err (!%p2102_p5)
}
 0x48c   :  { %1475 = dma.vmem_to_hbm [thread:$0]  %s1473_s12, 128, %s2296_s9, [#allocation4]  }
 0x48d   :  { %2112 = dma.done.wait [#allocation4], 128  }
 0x48e   :  { %2113 = vsyncadd [#allocation4], 4294967168 }
 0x48f   :  { %1479 = vsyncpa [#allocation3], 1 }
 0x490   :  { %1480 = vsyncpa [#allocation6], 1 }
 0x491   :  { %1481 = vsyncpa [#allocation9], 1 }
 0x492   :  { %1482 = vsyncpa [#allocation4], 1 }

</bundles_post_ra>
